<compile_context>
chip_gen: v6e
topology: v6e:2x2x1
jax: 0.10.0
libtpu: 0.0.40
codegen_flags: <defaults>
</compile_context>

<pallas_src>
import jax
import jax.numpy as jnp
from jax.experimental import pallas as pl
from jax.experimental.pallas import tpu as pltpu

BN_EPS = 1e-5


def _round_up(n, m):
    return ((n + m - 1) // m) * m


def classifier_kernel(
    x_ref,
    w1_ref, b1_ref,
    w2_ref, b2_ref,
    w3_ref, b3_ref,
    w4_ref, b4_ref,
    o_ref,
):
    # Layer 1: (folded Linear+BN) + ReLU   [Dropout = identity in eval].
    # x arrives as f32; cast to bf16 on the VPU (free filler under the DMA).
    h = jnp.dot(x_ref[...].astype(jnp.bfloat16), w1_ref[...],
                preferred_element_type=jnp.float32) + b1_ref[...]
    h = jnp.maximum(h, 0.0)

    # Layer 2
    h = jnp.dot(h.astype(jnp.bfloat16), w2_ref[...],
                preferred_element_type=jnp.float32) + b2_ref[...]
    h = jnp.maximum(h, 0.0)

    # Layer 3
    h = jnp.dot(h.astype(jnp.bfloat16), w3_ref[...],
                preferred_element_type=jnp.float32) + b3_ref[...]
    h = jnp.maximum(h, 0.0)

    # Final Linear -- stored un-padded (tb, output_dim); a handful of masked
    # stores per tile is far cheaper than a 128x inflated f32 slab.
    out = jnp.dot(h.astype(jnp.bfloat16), w4_ref[...],
                  preferred_element_type=jnp.float32) + b4_ref[...]
    o_ref[...] = out.astype(o_ref.dtype)


def _choose_batch_tile(batch, block_batch):
    if batch <= 16:
        # Single full-array block: always layout-legal, nothing to split.
        return batch
    # Prefer >= 2 grid steps so a dual-TensorCore chip (v7x) can shard the
    # batch axis; keep tile rows a multiple of 8 so a partial last block is
    # still a legal (8,128)-aligned block shape.
    return max(8, min(block_batch, _round_up(pl.cdiv(batch, 2), 8)))


def simplified_classifier(x, params, *, block_batch=4096):
    """x: (batch, input_dim) float32. params: dict of weights (see init_params)."""
    batch, input_dim = x.shape
    output_dim = params["w4"].shape[1]

    # ---- Fold eval-mode BatchNorm into the preceding Linear (exact, in f32);
    # ---- only the folded product is cast to bf16 for the MXU. ----
    weights, biases = [], []
    for i in range(1, 4):
        scale = params[f"g{i}"] * jax.lax.rsqrt(params[f"v{i}"] + BN_EPS)      # (1, out)
        weights.append((params[f"w{i}"] * scale).astype(jnp.bfloat16))          # (in, out)
        biases.append(((params[f"b{i}"] - params[f"m{i}"]) * scale
                       + params[f"be{i}"]).astype(jnp.float32))                 # (1, out)
    weights.append(params["w4"].astype(jnp.bfloat16))
    biases.append(params["b4"].astype(jnp.float32))

    # ---- Batch tiling: no padding of x; Pallas handles the partial last tile. ----
    tb = _choose_batch_tile(batch, block_batch)
    grid = (pl.cdiv(batch, tb),)

    def resident(arr):
        # Full-array block with a constant index_map: fetched once, VMEM-resident.
        return pl.BlockSpec(arr.shape, lambda i: (0, 0))

    in_specs = [pl.BlockSpec((tb, input_dim), lambda i: (i, 0))]
    args = [x]
    for w, b in zip(weights, biases):
        in_specs += [resident(w), resident(b)]
        args += [w, b]

    out = pl.pallas_call(
        classifier_kernel,
        out_shape=jax.ShapeDtypeStruct((batch, output_dim), jnp.float32),
        grid=grid,
        in_specs=in_specs,
        out_specs=pl.BlockSpec((tb, output_dim), lambda i: (i, 0)),
        compiler_params=pltpu.CompilerParams(
            dimension_semantics=(pltpu.PARALLEL,),
            vmem_limit_bytes=32 * 1024 * 1024),
    )(*args)
    return out


def init_params(key, input_dim=128, hidden_dim=64, output_dim=1):
    """Deterministic parameter init mimicking PyTorch defaults.

    Linear: weight/bias ~ U(-1/sqrt(fan_in), 1/sqrt(fan_in)); weights stored
    pre-transposed as (in, out). BatchNorm1d: gamma=1, beta=0, running_mean=0,
    running_var=1. All 1-D params shaped (1, dim) for lane-friendly layout.
    """
    dims = [input_dim, hidden_dim, hidden_dim // 2, hidden_dim // 4, output_dim]
    params = {}
    keys = jax.random.split(key, 8)
    k_idx = 0
    for i in range(4):
        fan_in, fan_out = dims[i], dims[i + 1]
        bound = 1.0 / jnp.sqrt(jnp.float32(fan_in))
        w = jax.random.uniform(keys[k_idx], (fan_in, fan_out), jnp.float32, -bound, bound)
        k_idx += 1
        b = jax.random.uniform(keys[k_idx], (1, fan_out), jnp.float32, -bound, bound)
        k_idx += 1
        params[f"w{i + 1}"] = w
        params[f"b{i + 1}"] = b
        if i < 3:  # BatchNorm only after the first three linears
            params[f"g{i + 1}"] = jnp.ones((1, fan_out), jnp.float32)
            params[f"be{i + 1}"] = jnp.zeros((1, fan_out), jnp.float32)
            params[f"m{i + 1}"] = jnp.zeros((1, fan_out), jnp.float32)
            params[f"v{i + 1}"] = jnp.ones((1, fan_out), jnp.float32)
    return params


def reference_forward(x, params):
    """Pure-JAX f32 reference (eval-mode) for correctness check."""
    h = x
    for i in range(1, 4):
        h = h @ params[f"w{i}"] + params[f"b{i}"]
        h = (h - params[f"m{i}"]) * jax.lax.rsqrt(params[f"v{i}"] + BN_EPS) \
            * params[f"g{i}"] + params[f"be{i}"]
        h = jnp.maximum(h, 0.0)
    return h @ params["w4"] + params["b4"]


if __name__ == "__main__":
    key = jax.random.PRNGKey(0)
    k_x, k_p = jax.random.split(key)

    batch, input_dim, hidden_dim, output_dim = 8, 128, 64, 1
    x = jax.random.normal(k_x, (batch, input_dim), jnp.float32)
    params = init_params(k_p, input_dim, hidden_dim, output_dim)

    out = simplified_classifier(x, params)
    out = jax.block_until_ready(out)

    ref = reference_forward(x, params)
    assert out.shape == (batch, output_dim)
    # bf16 weights/activations (f32 accumulation) vs pure-f32 reference.
    assert jnp.allclose(out, ref, atol=2e-2, rtol=2e-2)

    print("KERNEL_OK")
</pallas_src>

<mosaic_0001>
module attributes {stable_mosaic.version = 11 : i64} {
  func.func @classifier_kernel(%arg0: i32, %arg1: memref<8x128xf32, #tpu.memory_space<vmem>>, %arg2: memref<128x64xbf16, #tpu.memory_space<vmem>>, %arg3: memref<1x64xf32, #tpu.memory_space<vmem>>, %arg4: memref<64x32xbf16, #tpu.memory_space<vmem>>, %arg5: memref<1x32xf32, #tpu.memory_space<vmem>>, %arg6: memref<32x16xbf16, #tpu.memory_space<vmem>>, %arg7: memref<1x16xf32, #tpu.memory_space<vmem>>, %arg8: memref<16x1xbf16, #tpu.memory_space<vmem>>, %arg9: memref<1x1xf32, #tpu.memory_space<vmem>>, %arg10: memref<8x1xf32, #tpu.memory_space<vmem>>) attributes {dimension_semantics = [#tpu.dimension_semantics<parallel>], iteration_bounds = array<i64: 1>, scalar_prefetch = 0 : i64, scratch_operands = 0 : i64, tpu.core_type = #tpu.core_type<tc>, window_params = [{transform_indices = @transform_0, window_bounds = array<i64: 8, 128>}, {pipeline_mode = #tpu.pipeline_mode<synchronous>, transform_indices = @transform_1, window_bounds = array<i64: 128, 64>}, {pipeline_mode = #tpu.pipeline_mode<synchronous>, transform_indices = @transform_2, window_bounds = array<i64: 1, 64>}, {pipeline_mode = #tpu.pipeline_mode<synchronous>, transform_indices = @transform_3, window_bounds = array<i64: 64, 32>}, {pipeline_mode = #tpu.pipeline_mode<synchronous>, transform_indices = @transform_4, window_bounds = array<i64: 1, 32>}, {pipeline_mode = #tpu.pipeline_mode<synchronous>, transform_indices = @transform_5, window_bounds = array<i64: 32, 16>}, {pipeline_mode = #tpu.pipeline_mode<synchronous>, transform_indices = @transform_6, window_bounds = array<i64: 1, 16>}, {pipeline_mode = #tpu.pipeline_mode<synchronous>, transform_indices = @transform_7, window_bounds = array<i64: 16, 1>}, {pipeline_mode = #tpu.pipeline_mode<synchronous>, transform_indices = @transform_8, window_bounds = array<i64: 1, 1>}, {transform_indices = @transform_9, window_bounds = array<i64: 8, 1>}]} {
    %c0 = arith.constant 0 : index
    %c0_0 = arith.constant 0 : index
    %0 = vector.load %arg1[%c0, %c0_0] : memref<8x128xf32, #tpu.memory_space<vmem>>, vector<8x128xf32>
    %1 = arith.truncf %0 : vector<8x128xf32> to vector<8x128xbf16>
    %c0_1 = arith.constant 0 : index
    %c0_2 = arith.constant 0 : index
    %2 = vector.load %arg2[%c0_1, %c0_2] : memref<128x64xbf16, #tpu.memory_space<vmem>>, vector<128x64xbf16>
    %cst = arith.constant dense<0.000000e+00> : vector<8x64xf32>
    %3 = tpu.matmul %1, %2, %cst {dimension_numbers = #tpu.dot_dimension_numbers<[1], [0], [0], [1], [0, 0, 1, 1], [], []>} : vector<8x128xbf16>, vector<128x64xbf16>, vector<8x64xf32> -> vector<8x64xf32>
    %c0_3 = arith.constant 0 : index
    %c0_4 = arith.constant 0 : index
    %4 = vector.load %arg3[%c0_3, %c0_4] : memref<1x64xf32, #tpu.memory_space<vmem>>, vector<1x64xf32>
    %5 = vector.broadcast %4 : vector<1x64xf32> to vector<8x64xf32>
    %6 = arith.addf %3, %5 : vector<8x64xf32>
    %cst_5 = arith.constant 0.000000e+00 : f32
    %7 = vector.broadcast %cst_5 : f32 to vector<8x64xf32>
    %8 = arith.maximumf %6, %7 : vector<8x64xf32>
    %9 = arith.truncf %8 : vector<8x64xf32> to vector<8x64xbf16>
    %c0_6 = arith.constant 0 : index
    %c0_7 = arith.constant 0 : index
    %10 = vector.load %arg4[%c0_6, %c0_7] : memref<64x32xbf16, #tpu.memory_space<vmem>>, vector<64x32xbf16>
    %cst_8 = arith.constant dense<0.000000e+00> : vector<8x32xf32>
    %11 = tpu.matmul %9, %10, %cst_8 {dimension_numbers = #tpu.dot_dimension_numbers<[1], [0], [0], [1], [0, 0, 1, 1], [], []>} : vector<8x64xbf16>, vector<64x32xbf16>, vector<8x32xf32> -> vector<8x32xf32>
    %c0_9 = arith.constant 0 : index
    %c0_10 = arith.constant 0 : index
    %12 = vector.load %arg5[%c0_9, %c0_10] : memref<1x32xf32, #tpu.memory_space<vmem>>, vector<1x32xf32>
    %13 = vector.broadcast %12 : vector<1x32xf32> to vector<8x32xf32>
    %14 = arith.addf %11, %13 : vector<8x32xf32>
    %cst_11 = arith.constant 0.000000e+00 : f32
    %15 = vector.broadcast %cst_11 : f32 to vector<8x32xf32>
    %16 = arith.maximumf %14, %15 : vector<8x32xf32>
    %17 = arith.truncf %16 : vector<8x32xf32> to vector<8x32xbf16>
    %c0_12 = arith.constant 0 : index
    %c0_13 = arith.constant 0 : index
    %18 = vector.load %arg6[%c0_12, %c0_13] : memref<32x16xbf16, #tpu.memory_space<vmem>>, vector<32x16xbf16>
    %cst_14 = arith.constant dense<0.000000e+00> : vector<8x16xf32>
    %19 = tpu.matmul %17, %18, %cst_14 {dimension_numbers = #tpu.dot_dimension_numbers<[1], [0], [0], [1], [0, 0, 1, 1], [], []>} : vector<8x32xbf16>, vector<32x16xbf16>, vector<8x16xf32> -> vector<8x16xf32>
    %c0_15 = arith.constant 0 : index
    %c0_16 = arith.constant 0 : index
    %20 = vector.load %arg7[%c0_15, %c0_16] : memref<1x16xf32, #tpu.memory_space<vmem>>, vector<1x16xf32>
    %21 = vector.broadcast %20 : vector<1x16xf32> to vector<8x16xf32>
    %22 = arith.addf %19, %21 : vector<8x16xf32>
    %cst_17 = arith.constant 0.000000e+00 : f32
    %23 = vector.broadcast %cst_17 : f32 to vector<8x16xf32>
    %24 = arith.maximumf %22, %23 : vector<8x16xf32>
    %25 = arith.truncf %24 : vector<8x16xf32> to vector<8x16xbf16>
    %c0_18 = arith.constant 0 : index
    %c0_19 = arith.constant 0 : index
    %26 = vector.load %arg8[%c0_18, %c0_19] : memref<16x1xbf16, #tpu.memory_space<vmem>>, vector<16x1xbf16>
    %cst_20 = arith.constant dense<0.000000e+00> : vector<8x1xf32>
    %27 = tpu.matmul %25, %26, %cst_20 {dimension_numbers = #tpu.dot_dimension_numbers<[1], [0], [0], [1], [0, 0, 1, 1], [], []>} : vector<8x16xbf16>, vector<16x1xbf16>, vector<8x1xf32> -> vector<8x1xf32>
    %c0_21 = arith.constant 0 : index
    %c0_22 = arith.constant 0 : index
    %28 = vector.load %arg9[%c0_21, %c0_22] : memref<1x1xf32, #tpu.memory_space<vmem>>, vector<1x1xf32>
    %29 = vector.broadcast %28 : vector<1x1xf32> to vector<8x1xf32>
    %30 = arith.addf %27, %29 : vector<8x1xf32>
    %c0_23 = arith.constant 0 : index
    %c0_24 = arith.constant 0 : index
    %31 = vector.load %arg10[%c0_23, %c0_24] : memref<8x1xf32, #tpu.memory_space<vmem>>, vector<8x1xf32>
    tpu.vector_store %arg10[%c0_23, %c0_24], %30 {strides = array<i32>} : memref<8x1xf32, #tpu.memory_space<vmem>>, vector<8x1xf32>,
    return
  }
  func.func @transform_0(%arg0: i32) -> (i32, i32) {
    %c0_i32 = arith.constant 0 : i32
    %c0_i32_0 = arith.constant 0 : i32
    return %arg0, %c0_i32 : i32, i32
  }
  func.func @transform_1(%arg0: i32) -> (i32, i32) {
    %c0_i32 = arith.constant 0 : i32
    %c0_i32_0 = arith.constant 0 : i32
    %c0_i32_1 = arith.constant 0 : i32
    return %c0_i32, %c0_i32_0 : i32, i32
  }
  func.func @transform_2(%arg0: i32) -> (i32, i32) {
    %c0_i32 = arith.constant 0 : i32
    %c0_i32_0 = arith.constant 0 : i32
    %c0_i32_1 = arith.constant 0 : i32
    return %c0_i32, %c0_i32_0 : i32, i32
  }
  func.func @transform_3(%arg0: i32) -> (i32, i32) {
    %c0_i32 = arith.constant 0 : i32
    %c0_i32_0 = arith.constant 0 : i32
    %c0_i32_1 = arith.constant 0 : i32
    return %c0_i32, %c0_i32_0 : i32, i32
  }
  func.func @transform_4(%arg0: i32) -> (i32, i32) {
    %c0_i32 = arith.constant 0 : i32
    %c0_i32_0 = arith.constant 0 : i32
    %c0_i32_1 = arith.constant 0 : i32
    return %c0_i32, %c0_i32_0 : i32, i32
  }
  func.func @transform_5(%arg0: i32) -> (i32, i32) {
    %c0_i32 = arith.constant 0 : i32
    %c0_i32_0 = arith.constant 0 : i32
    %c0_i32_1 = arith.constant 0 : i32
    return %c0_i32, %c0_i32_0 : i32, i32
  }
  func.func @transform_6(%arg0: i32) -> (i32, i32) {
    %c0_i32 = arith.constant 0 : i32
    %c0_i32_0 = arith.constant 0 : i32
    %c0_i32_1 = arith.constant 0 : i32
    return %c0_i32, %c0_i32_0 : i32, i32
  }
  func.func @transform_7(%arg0: i32) -> (i32, i32) {
    %c0_i32 = arith.constant 0 : i32
    %c0_i32_0 = arith.constant 0 : i32
    %c0_i32_1 = arith.constant 0 : i32
    return %c0_i32, %c0_i32_0 : i32, i32
  }
  func.func @transform_8(%arg0: i32) -> (i32, i32) {
    %c0_i32 = arith.constant 0 : i32
    %c0_i32_0 = arith.constant 0 : i32
    %c0_i32_1 = arith.constant 0 : i32
    return %c0_i32, %c0_i32_0 : i32, i32
  }
  func.func @transform_9(%arg0: i32) -> (i32, i32) {
    %c0_i32 = arith.constant 0 : i32
    %c0_i32_0 = arith.constant 0 : i32
    return %arg0, %c0_i32 : i32, i32
  }
}

</mosaic_0001>

<bundles_post_ra>
// kernel: tpu_custom_call.1
= control target key start
LH: loop header
LB: loop body
LE: loop exit
PB: predicated region body
PF: predicated region fallthrough
CT: control target
= control target key end

     0   :  { %v473_v0 = vmov 0.0   ;;  %vm474_vm0 = vmmov 0   ;;  %vm189_vm1 = vcmask 523264   ;;  %vm258_vm2 = vcmask 261120   ;;  %s611_s1 = inlined_call_operand.vmem [shape: bf16[128,64], index: 1, kind: input, shape index: {}]   ;;  %s612_s3 = inlined_call_operand.vmem [shape: bf16[64,32], index: 3, kind: input, shape index: {}]   ;;  %s613_s0 = inlined_call_operand.vmem [shape: f32[8,128], index: 0, kind: input, shape index: {}]   ;;  %s614_s5 = inlined_call_operand.vmem [shape: bf16[32,16], index: 5, kind: input, shape index: {}]   ;;  %s615_s2 = inlined_call_operand.vmem [shape: f32[1,64], index: 2, kind: input, shape index: {}]   ;;  %s616_s7 = inlined_call_operand.vmem [shape: bf16[16,1], index: 7, kind: input, shape index: {}]   ;;  %s617_s4 = inlined_call_operand.vmem [shape: f32[1,32], index: 4, kind: input, shape index: {}]   ;;  %s618_s8 = inlined_call_operand.<no memory space> [shape: f32[1,1], index: 8, kind: input, shape index: {}]   ;;  %s619_s6 = inlined_call_operand.vmem [shape: f32[1,16], index: 6, kind: input, shape index: {}]   ;;  %s620_s9 = inlined_call_operand.vmem [shape: f32[8,1], index: 9, kind: output, shape index: {}]  }
   0x1   :  { %410 = vmatprep.subr.bf16.mxu0 %v473_v0  ;;  %v458_v1 = vld [vmem:[%s611_s1 + $0x38] sm:$0xff]   ;;  %426 = vmatprep.mubr.msk.bf16.mxu0 %vm474_vm0, %v473_v0  ;;  %v459_v2 = vld [vmem:[%s611_s1 + $0x30] sm:$0xff]   ;;  %v460_v3 = vld [vmem:[%s611_s1 + $0x28] sm:$0xff]   ;;  %v14_v34 = vstv %s618_s8  ;;  %vm319_vm3 = vcmask 130048   ;;  %vm363_vm4 = vcmask 7168  }
   0x2   :  { %430 = vmatprep.subr.bf16.mxu1 %v473_v0  ;;  %438 = vmatprep.mubr.msk.bf16.mxu1 %vm474_vm0, %v473_v0  ;;  %v466_v4 = vld [vmem:[%s612_s3 + $0x18] sm:$0xff]   ;;  %v461_v5 = vld [vmem:[%s611_s1 + $0x20] sm:$0xff]   ;;  %v467_v6 = vld [vmem:[%s612_s3 + $0x10] sm:$0xff]   ;;  %15 = vst [vmem:[#allocation2] sm:$0x1] %v14_v34 }
   0x3   :  { %411 = vmatpush3.bf16.msra.mxu0 %v458_v1  ;;  %431 = vmatpush3.bf16.msra.mxu1 %v466_v4  ;;  %v462_v7 = vld [vmem:[%s611_s1 + $0x18] sm:$0xff]   ;;  %v463_v8 = vld [vmem:[%s611_s1 + $0x10] sm:$0xff]   ;;  %v464_v9 = vld [vmem:[%s611_s1 + $0x8] sm:$0xff]  }
   0x4   :  { %412 = vmatprep.subr.bf16.mxu0 %v473_v0  ;;  %432 = vmatprep.subr.bf16.mxu1 %v473_v0  ;;  %v465_v10 = vld [vmem:[%s611_s1] sm:$0xff]   ;;  %v468_v13 = vld [vmem:[%s612_s3 + $0x8] sm:$0xff]  }
   0x5   :  { %v35_v11 = vld [vmem:[%s613_s0] sm:$0xff]  ;;  %v470_v21 = vld [vmem:[%s614_s5 + $0x8] sm:$0xff]  }
   0x6   :  { %v36_v12 = vpack.c.bf16 %v35_v11, %v35_v11  ;;  %v469_v14 = vld [vmem:[%s612_s3] sm:$0xff]  }
   0x7   :  { %413 = vmatpush3.bf16.msra.mxu0 %v459_v2  ;;  %433 = vmatpush3.bf16.msra.mxu1 %v467_v6  ;;  %v369_v15 = vld [vmem:[%s615_s2] ss:$0 sm:$0xff] }
   0x8   :  { %414 = vmatprep.subr.bf16.mxu0 %v473_v0  ;;  %434 = vmatprep.subr.bf16.mxu1 %v473_v0  ;;  %v471_v24 = vld [vmem:[%s614_s5] sm:$0xff]  }
   0x9   :  { %v378_v25 = vld [vmem:[%s617_s4] ss:$0 sm:$0xff] }
   0xa   :  { %v472_v31 = vld [vmem:[%s616_s7] sm:$0xff]  }
   0xb   :  { %415 = vmatpush3.bf16.msra.mxu0 %v460_v3  ;;  %435 = vmatpush3.bf16.msra.mxu1 %v468_v13  ;;  %v384_v35 = vld [vmem:[%s619_s6] ss:$0 sm:$0xff] }
   0xc   :  { %416 = vmatprep.subr.bf16.mxu0 %v473_v0  ;;  %436 = vmatprep.subr.bf16.mxu1 %v473_v0  ;;  %v388_v43 = vld [vmem:[#allocation2] ss:$0 sm:$0xff] }
   0xf   :  { %417 = vmatpush3.bf16.msra.mxu0 %v461_v5  ;;  %437 = vmatpush3.bf16.msra.mxu1 %v469_v14 }
  0x10   :  { %418 = vmatprep.subr.bf16.mxu0 %v473_v0  ;;  %442 = vmatprep.subr.bf16.mxu1 %v473_v0 }
  0x13   :  { %419 = vmatpush3.bf16.msra.mxu0 %v462_v7 }
  0x14   :  { %420 = vmatprep.subr.bf16.mxu0 %v473_v0 }
  0x17   :  { %421 = vmatpush3.bf16.msra.mxu0 %v463_v8 }
  0x18   :  { %422 = vmatprep.subr.bf16.mxu0 %v473_v0 }
  0x1b   :  { %423 = vmatpush3.bf16.msra.mxu0 %v464_v9 }
  0x1c   :  { %424 = vmatprep.subr.bf16.mxu0 %v473_v0 }
  0x1f   :  { %425 = vmatpush3.bf16.msra.mxu0 %v465_v10 }
  0x22   :  { %427 = vmatmul.mubr.bf16.vlgmr.msra.gmra.mxu0 %v36_v12 }
  0xe2   :  { %v142_v16 = vpop.f32.mrf.mxu0 }
  0xe3   :  { %v143_v17 = vadd.f32 %v369_v15, %v142_v16 }
  0xe4   :  { %v428_v18 = vpop.f32.mrf.mxu0 }
  0xe5   :  { %v148_v19 = vmax.f32 %v143_v17, 0.0 }
  0xe6   :  { %v145_v20 = vpop.f32.mrf.mxu0 }
  0xe7   :  { %v149_v22 = vpack.c.bf16 %v148_v19, %v148_v19 }
  0xe8   :  { %v429_v23 = vpop.f32.mrf.mxu0 }
  0xe9   :  { %439 = vmatmul.mubr.msk.bf16.vlgmr.msra.gmra.mxu1 %vm189_vm1, %v149_v22 }
  0xea   :  { %443 = vmatpush3.bf16.msra.mxu1 %v470_v21  ;;  %446 = vmatprep.mubr.msk.bf16.mxu1 %vm474_vm0, %v473_v0 }
  0xeb   :  { %444 = vmatprep.subr.bf16.mxu1 %v473_v0 }
  0xee   :  { %445 = vmatpush3.bf16.msra.mxu1 %v471_v24 }
  0xef   :  { %450 = vmatprep.subr.bf16.mxu1 %v473_v0 }
 0x1a9   :  { %v227_v26 = vpop.f32.mrf.mxu1 }
 0x1aa   :  { %v228_v27 = vadd.f32 %v378_v25, %v227_v26 }
 0x1ab   :  { %v440_v28 = vpop.f32.mrf.mxu1 }
 0x1ac   :  { %v233_v29 = vmax.f32 %v228_v27, 0.0 }
 0x1ad   :  { %v230_v30 = vpop.f32.mrf.mxu1 }
 0x1ae   :  { %v234_v32 = vpack.c.bf16 %v233_v29, %v233_v29 }
 0x1af   :  { %v441_v33 = vpop.f32.mrf.mxu1 }
 0x1b0   :  { %447 = vmatmul.mubr.msk.bf16.vlgmr.msra.gmra.mxu1 %vm258_vm2, %v234_v32 }
 0x1b1   :  { %451 = vmatpush3.bf16.msra.mxu1 %v472_v31  ;;  %452 = vmatprep.mubr.msk.bf16.mxu1 %vm474_vm0, %v473_v0 }
 0x270   :  { %v296_v36 = vpop.f32.mrf.mxu1 }
 0x271   :  { %v297_v37 = vadd.f32 %v384_v35, %v296_v36 }
 0x272   :  { %v448_v38 = vpop.f32.mrf.mxu1 }
 0x273   :  { %v302_v39 = vmax.f32 %v297_v37, 0.0 }
 0x274   :  { %v299_v40 = vpop.f32.mrf.mxu1 }
 0x275   :  { %v303_v41 = vpack.c.bf16 %v302_v39, %v302_v39 }
 0x276   :  { %v449_v42 = vpop.f32.mrf.mxu1 }
 0x277   :  { %453 = vmatmul.mubr.msk.bf16.vlgmr.msra.gmra.mxu1 %vm319_vm3, %v303_v41 }
 0x337   :  { %v357_v44 = vpop.f32.mrf.mxu1 }
 0x338   :  { %v358_v45 = vadd.f32 %v388_v43, %v357_v44 }
 0x339   :  { %v454_v46 = vpop.f32.mrf.mxu1 }
 0x33a   :  { %364 = vst.msk [vmem:[%s620_s9] sm:$0xff] %vm363_vm4, %v358_v45 }
 0x33b   :  { %v360_v47 = vpop.f32.mrf.mxu1 }
 0x33d   :  { %v455_v48 = vpop.f32.mrf.mxu1 }

</bundles_post_ra>
